<compile_context>
chip_gen: v7x
topology: tpu7x:2x2x1
jax: 0.10.0
libtpu: 0.0.40
codegen_flags: <defaults>
</compile_context>

<pallas_src>
import functools
import numpy as np

import jax
import jax.numpy as jnp
from jax.experimental import pallas as pl
from jax.experimental.pallas import tpu as pltpu

LANE = 128
VMEM_LIMIT = 64 * 1024 * 1024


# ---------------------------------------------------------------------------
# small static helpers
# ---------------------------------------------------------------------------

def _round_up(x, m):
    return (x + m - 1) // m * m


def _pick_div(dim, prefs):
    for p in prefs:
        if dim % p == 0:
            return p
    return dim


def _row_tile(n, max_tile):
    t = min(max_tile, _round_up(n, 8))
    return t, _round_up(n, t)


def _pad_rows(a, rows_p):
    r = a.shape[0]
    if rows_p == r:
        return a
    return jnp.pad(a, ((0, rows_p - r),) + ((0, 0),) * (a.ndim - 1))


def pad_lanes(a):
    c = a.shape[-1]
    cp = _round_up(c, LANE)
    if cp == c:
        return a
    return jnp.pad(a, [(0, 0)] * (a.ndim - 1) + [(0, cp - c)])


# ---------------------------------------------------------------------------
# Pallas kernels
# ---------------------------------------------------------------------------

def _dense_kernel(x_ref, w_ref, b_ref, o_ref, acc_ref, *, activation):
    @pl.when(pl.program_id(2) == 0)
    def _():
        acc_ref[...] = jnp.zeros_like(acc_ref)

    acc_ref[...] += jnp.dot(x_ref[...], w_ref[...],
                            preferred_element_type=jnp.float32)

    @pl.when(pl.program_id(2) == pl.num_programs(2) - 1)
    def _():
        y = acc_ref[...] + b_ref[...]
        if activation == "relu":
            y = jnp.maximum(y, 0.0)
        elif activation == "tanh":
            y = jnp.tanh(y)
        o_ref[...] = y.astype(o_ref.dtype)


def pallas_dense(x2d, w, b, activation=None):
    """(M,Kp) bf16 @ (Kp,Np) bf16 + bias, f32 accumulation, bf16 output."""
    m, k = x2d.shape
    n = w.shape[1]
    tm, mp = _row_tile(m, 256)
    tn = _pick_div(n, (256, 128))
    tk = _pick_div(k, (512, 256, 128))
    xb = _pad_rows(x2d, mp)

    out = pl.pallas_call(
        functools.partial(_dense_kernel, activation=activation),
        out_shape=jax.ShapeDtypeStruct((mp, n), jnp.bfloat16),
        grid=(mp // tm, n // tn, k // tk),
        in_specs=[
            pl.BlockSpec((tm, tk), lambda i, j, kk: (i, kk)),
            pl.BlockSpec((tk, tn), lambda i, j, kk: (kk, j)),
            pl.BlockSpec((1, tn), lambda i, j, kk: (0, j)),
        ],
        out_specs=pl.BlockSpec((tm, tn), lambda i, j, kk: (i, j)),
        scratch_shapes=[pltpu.VMEM((tm, tn), jnp.float32)],
        compiler_params=pltpu.CompilerParams(
            dimension_semantics=("parallel", "parallel", "arbitrary"),
            vmem_limit_bytes=VMEM_LIMIT),
    )(xb, w, b)
    return out if mp == m else out[:m]


def dense(x, p, activation=None):
    shp = x.shape
    y = pallas_dense(x.reshape(-1, shp[-1]), p["w"], p["b"], activation)
    return y.reshape(shp[:-1] + (p["w"].shape[1],))


def _conv1d_kernel(x_ref, w_ref, b_ref, o_ref, *, kk, t_tile, halo, activation):
    ti = pl.program_id(1)
    t0 = pl.multiple_of(ti * t_tile, t_tile)
    xw = x_ref[0, pl.ds(t0, t_tile + halo), :]            # (t_tile+halo, Cin_p)
    if kk > 1:
        lhs = jnp.concatenate(
            [xw[tap:tap + t_tile, :] for tap in range(kk)], axis=-1)
    else:
        lhs = xw
    y = jnp.dot(lhs, w_ref[...], preferred_element_type=jnp.float32) + b_ref[...]
    if activation == "relu":
        y = jnp.maximum(y, 0.0)
    elif activation == "tanh":
        y = jnp.tanh(y)
    o_ref[0] = y.astype(o_ref.dtype)


def conv1d(x, p, activation=None):
    """x: (B, T, Cin_p) bf16; p: prepared conv params (stride 1)."""
    kk, padding = p["kk"], p["pad"]
    if kk == 1:                        # pointwise conv == dense over channels
        return dense(x, p, activation)

    w2d, b = p["w"], p["b"]
    bsz, t, cin = x.shape
    coutp = w2d.shape[1]
    t_out = t + 2 * padding - kk + 1
    t_tile = min(256, _round_up(t_out, 8))
    t_out_p = _round_up(t_out, t_tile)
    halo = _round_up(kk - 1, 8)        # 8-aligned halo so in-kernel loads stay aligned
    time_in = t_out_p + halo
    tn = _pick_div(coutp, (256, 128))

    xp = jnp.pad(x, ((0, 0), (padding, time_in - t - padding), (0, 0)))

    out = pl.pallas_call(
        functools.partial(_conv1d_kernel, kk=kk, t_tile=t_tile, halo=halo,
                          activation=activation),
        out_shape=jax.ShapeDtypeStruct((bsz, t_out_p, coutp), jnp.bfloat16),
        grid=(bsz, t_out_p // t_tile, coutp // tn),
        in_specs=[
            pl.BlockSpec((1, time_in, cin), lambda bi, ti, j: (bi, 0, 0)),
            pl.BlockSpec((kk * cin, tn), lambda bi, ti, j: (0, j)),
            pl.BlockSpec((1, tn), lambda bi, ti, j: (0, j)),
        ],
        out_specs=pl.BlockSpec((1, t_tile, tn), lambda bi, ti, j: (bi, ti, j)),
        compiler_params=pltpu.CompilerParams(
            dimension_semantics=("parallel", "parallel", "parallel"),
            vmem_limit_bytes=VMEM_LIMIT),
    )(xp, w2d, b)
    return out if t_out_p == t_out else out[:, :t_out, :]


def _ln_kernel(*refs, has_res, has_mask, d_real, eps=1e-5):
    i = 0
    x_ref = refs[i]; i += 1
    r_ref = None
    if has_res:
        r_ref = refs[i]; i += 1
    g_ref, b_ref = refs[i], refs[i + 1]; i += 2
    m_ref = None
    if has_mask:
        m_ref = refs[i]; i += 1
    o_ref = refs[i]

    x = x_ref[...].astype(jnp.float32)
    if has_res:
        x = x + r_ref[...].astype(jnp.float32)
    # padded lanes are guaranteed zero, so sums over the padded width are
    # exactly the sums over the d_real real channels.
    inv_d = 1.0 / float(d_real)
    mu = jnp.sum(x, axis=-1, keepdims=True) * inv_d
    var = jnp.sum(x * x, axis=-1, keepdims=True) * inv_d - mu * mu
    y = (x - mu) * jax.lax.rsqrt(var + eps) * g_ref[...] + b_ref[...]
    if has_mask:
        y = jnp.where(m_ref[...] > 0.5, 0.0, y)
    o_ref[...] = y.astype(o_ref.dtype)


def fused_layernorm(x, g, b, d_real, residual=None, pad_mask=None):
    """Residual add + LayerNorm + pad-mask zeroing, bf16 in / bf16 out."""
    shp = x.shape
    dp = shp[-1]
    x2 = x.reshape(-1, dp)
    n = x2.shape[0]
    tr, npad = _row_tile(n, 512)

    args = [_pad_rows(x2, npad)]
    specs = [pl.BlockSpec((tr, dp), lambda i: (i, 0))]
    if residual is not None:
        args.append(_pad_rows(residual.reshape(-1, dp), npad))
        specs.append(pl.BlockSpec((tr, dp), lambda i: (i, 0)))
    args += [g, b]
    specs += [pl.BlockSpec((1, dp), lambda i: (0, 0))] * 2
    if pad_mask is not None:
        args.append(_pad_rows(pad_mask.reshape(-1, 1).astype(jnp.float32), npad))
        specs.append(pl.BlockSpec((tr, 1), lambda i: (i, 0)))

    out = pl.pallas_call(
        functools.partial(_ln_kernel, has_res=residual is not None,
                          has_mask=pad_mask is not None, d_real=d_real),
        out_shape=jax.ShapeDtypeStruct((npad, dp), jnp.bfloat16),
        grid=(npad // tr,),
        in_specs=specs,
        out_specs=pl.BlockSpec((tr, dp), lambda i: (i, 0)),
        compiler_params=pltpu.CompilerParams(
            dimension_semantics=("parallel",)),
    )(*args)
    out = out if npad == n else out[:n]
    return out.reshape(shp)


def _flash_attn_kernel(q_ref, k_ref, v_ref, m_ref, o_ref, m_sc, l_sc, acc_sc):
    @pl.when(pl.program_id(2) == 0)
    def _():
        m_sc[...] = jnp.full(m_sc.shape, -1e30, jnp.float32)
        l_sc[...] = jnp.zeros(l_sc.shape, jnp.float32)
        acc_sc[...] = jnp.zeros(acc_sc.shape, jnp.float32)

    q = q_ref[0]                       # (tq, dk) bf16, scale folded into W_q
    k = k_ref[0]                       # (tkv, dk) bf16
    v = v_ref[0]                       # (tkv, dv) bf16
    s = jax.lax.dot_general(q, k, (((1,), (1,)), ((), ())),
                            preferred_element_type=jnp.float32)   # (tq, tkv)
    s = jnp.where(m_ref[0] > 0.5, -1e9, s)          # (1, tkv) key-pad mask

    m_prev = m_sc[...]
    m_new = jnp.maximum(m_prev, jnp.max(s, axis=-1, keepdims=True))
    alpha = jnp.exp(m_prev - m_new)
    p = jnp.exp(s - m_new)
    l_sc[...] = alpha * l_sc[...] + jnp.sum(p, axis=-1, keepdims=True)
    acc_sc[...] = alpha * acc_sc[...] + jnp.dot(
        p.astype(v.dtype), v, preferred_element_type=jnp.float32)
    m_sc[...] = m_new

    @pl.when(pl.program_id(2) == pl.num_programs(2) - 1)
    def _():
        o_ref[0] = (acc_sc[...] * pl.reciprocal(l_sc[...], approx=True)
                    ).astype(o_ref.dtype)


def pallas_attention(q, k, v, key_pad_mask):
    """q,k,v: (B,H,T,dh) bf16 (q pre-scaled); key_pad_mask: (B,T) bool."""
    b, h, t, dk = q.shape
    dv = v.shape[-1]
    tile = min(128, _round_up(t, 8))
    tp = _round_up(t, tile)
    if tp != t:
        padt = ((0, 0), (0, 0), (0, tp - t), (0, 0))
        q, k, v = jnp.pad(q, padt), jnp.pad(k, padt), jnp.pad(v, padt)
    qf = q.reshape(b * h, tp, dk)
    kf = k.reshape(b * h, tp, dk)
    vf = v.reshape(b * h, tp, dv)
    mask = key_pad_mask.astype(jnp.float32).reshape(b, 1, t)
    if tp != t:
        mask = jnp.pad(mask, ((0, 0), (0, 0), (0, tp - t)), constant_values=1.0)

    out = pl.pallas_call(
        _flash_attn_kernel,
        out_shape=jax.ShapeDtypeStruct((b * h, tp, dv), jnp.bfloat16),
        grid=(b * h, tp // tile, tp // tile),
        in_specs=[
            pl.BlockSpec((1, tile, dk), lambda i, qi, ki: (i, qi, 0)),
            pl.BlockSpec((1, tile, dk), lambda i, qi, ki: (i, ki, 0)),
            pl.BlockSpec((1, tile, dv), lambda i, qi, ki: (i, ki, 0)),
            pl.BlockSpec((1, 1, tile), lambda i, qi, ki: (i // h, 0, ki)),
        ],
        out_specs=pl.BlockSpec((1, tile, dv), lambda i, qi, ki: (i, qi, 0)),
        scratch_shapes=[pltpu.VMEM((tile, 1), jnp.float32),
                        pltpu.VMEM((tile, 1), jnp.float32),
                        pltpu.VMEM((tile, dv), jnp.float32)],
        compiler_params=pltpu.CompilerParams(
            dimension_semantics=("parallel", "parallel", "arbitrary"),
            vmem_limit_bytes=VMEM_LIMIT),
    )(qf, kf, vf, mask)
    out = out.reshape(b, h, tp, dv)
    return out if tp == t else out[:, :, :t, :]


def _masked_loss_kernel(p_ref, t_ref, m_ref, o_ref, acc_ref, *, mode):
    @pl.when(pl.program_id(0) == 0)
    def _():
        acc_ref[...] = jnp.zeros_like(acc_ref)

    d = (p_ref[...].astype(jnp.float32) - t_ref[...]) * m_ref[...]
    if mode == "l1":
        d = jnp.abs(d)
    else:  # l2 / mse
        d = d * d
    acc_ref[...] += jnp.sum(d, axis=0, keepdims=True)       # per-lane partials

    @pl.when(pl.program_id(0) == pl.num_programs(0) - 1)
    def _():
        o_ref[...] = jnp.sum(acc_ref[...], axis=-1, keepdims=True)


def masked_loss(pred, target, row_valid, count, mode):
    """Mean L1/MSE over valid rows; row mask streamed as (rows,1)."""
    c = pred.shape[-1]
    p2 = pred.reshape(-1, c)
    t2 = target.reshape(-1, c).astype(jnp.float32)
    m2 = row_valid.reshape(-1, 1).astype(jnp.float32)
    rows = p2.shape[0]
    tr, rows_p = _row_tile(rows, 512)
    p2, t2, m2 = (_pad_rows(a, rows_p) for a in (p2, t2, m2))

    s = pl.pallas_call(
        functools.partial(_masked_loss_kernel, mode=mode),
        out_shape=jax.ShapeDtypeStruct((1, 1), jnp.float32),
        grid=(rows_p // tr,),
        in_specs=[
            pl.BlockSpec((tr, c), lambda i: (i, 0)),
            pl.BlockSpec((tr, c), lambda i: (i, 0)),
            pl.BlockSpec((tr, 1), lambda i: (i, 0)),
        ],
        out_specs=pl.BlockSpec((1, 1), lambda i: (0, 0)),
        scratch_shapes=[pltpu.VMEM((1, c), jnp.float32)],
        compiler_params=pltpu.CompilerParams(
            dimension_semantics=("arbitrary",)),
    )(p2, t2, m2)
    return s[0, 0] / jnp.maximum(count.astype(jnp.float32), 1.0)


# ---------------------------------------------------------------------------
# parameter preparation (pad + cast ONCE at init)
# ---------------------------------------------------------------------------

def prep_dense(w, b):
    k, n = w.shape
    kp, np_ = _round_up(k, LANE), _round_up(n, LANE)
    return {
        "w": jnp.pad(w, ((0, kp - k), (0, np_ - n))).astype(jnp.bfloat16),
        "b": jnp.pad(b.reshape(1, n), ((0, 0), (0, np_ - n))).astype(jnp.float32),
    }


def prep_conv(w, b, padding):
    """PyTorch Conv1d weight (Cout,Cin,K) -> (K*Cin_p, Cout_p) bf16."""
    cout, cin, kk = w.shape
    cinp, coutp = _round_up(cin, LANE), _round_up(cout, LANE)
    wt = jnp.transpose(w, (2, 1, 0))                        # (K, Cin, Cout)
    wt = jnp.pad(wt, ((0, 0), (0, cinp - cin), (0, coutp - cout)))
    return {
        "w": wt.reshape(kk * cinp, coutp).astype(jnp.bfloat16),
        "b": jnp.pad(b.reshape(1, cout),
                     ((0, 0), (0, coutp - cout))).astype(jnp.float32),
        "kk": kk, "pad": padding,
    }


def prep_ln(g, b):
    d = g.shape[0]
    dp = _round_up(d, LANE)
    pad = ((0, 0), (0, dp - d))
    return (jnp.pad(g.reshape(1, d), pad).astype(jnp.float32),
            jnp.pad(b.reshape(1, d), pad).astype(jnp.float32))


def prep_emb(e):
    return pad_lanes(e).astype(jnp.bfloat16)


# ---------------------------------------------------------------------------
# FastSpeech2 building blocks
# ---------------------------------------------------------------------------

def get_mask_from_lengths(lengths, max_len):
    ids = jnp.arange(max_len)
    return ids[None, :] >= lengths[:, None]       # True where padded


def fft_block(x, pad_mask, p, cfg):
    bsz, t, _ = x.shape
    h, dk, dv = cfg["n_head"], cfg["d_k"], cfg["d_v"]
    qdim, vdim = h * dk, h * dv

    # --- multi-head self-attention (fused QKV projection, scale pre-folded) ---
    residual = x
    qkv = dense(x, p["qkv"])                                # (B,T,QKV_p) bf16
    q = qkv[..., :qdim].reshape(bsz, t, h, dk).transpose(0, 2, 1, 3)
    k = qkv[..., qdim:2 * qdim].reshape(bsz, t, h, dk).transpose(0, 2, 1, 3)
    v = qkv[..., 2 * qdim:2 * qdim + vdim].reshape(bsz, t, h, dv).transpose(0, 2, 1, 3)
    ctx = pallas_attention(q, k, v, pad_mask)               # (B,H,T,dv) bf16
    ctx = pad_lanes(ctx.transpose(0, 2, 1, 3).reshape(bsz, t, vdim))
    ctx = dense(ctx, p["out"])
    x = fused_layernorm(ctx, p["ln1_g"], p["ln1_b"], cfg["d_model"],
                        residual=residual, pad_mask=pad_mask)

    # --- position-wise feed forward (two Conv1d over time) ---
    residual = x
    y = conv1d(x, p["conv1"], activation="relu")
    y = conv1d(y, p["conv2"])
    y = fused_layernorm(y, p["ln2_g"], p["ln2_b"], cfg["d_model"],
                        residual=residual, pad_mask=pad_mask)
    return y


def variance_predictor(x, pad_mask, p, d_filter):
    y = conv1d(x, p["conv1"], activation="relu")
    y = fused_layernorm(y, p["ln1_g"], p["ln1_b"], d_filter)
    y = conv1d(y, p["conv2"], activation="relu")
    y = fused_layernorm(y, p["ln2_g"], p["ln2_b"], d_filter)
    y = dense(y, p["lin"])[..., 0]
    return jnp.where(pad_mask, 0.0, y.astype(jnp.float32))


def length_regulator(x, durations, max_len):
    # data-dependent expansion done with a JAX gather (glue).
    cum = jnp.cumsum(durations, axis=1)
    mel_len = cum[:, -1]
    frame_idx = jnp.arange(max_len)
    idx = jax.vmap(lambda c: jnp.searchsorted(c, frame_idx, side="right"))(cum)
    idx = jnp.minimum(idx, x.shape[1] - 1)
    out = jnp.take_along_axis(x, idx[..., None], axis=1)
    valid = frame_idx[None, :] < mel_len[:, None]
    out = jnp.where(valid[..., None], out, 0.0)
    return out, mel_len


def variance_adaptor(params, x, src_mask, mel_mask, max_mel_len,
                     p_target, e_target, d_target):
    vpf = params["cfg"]["vp_filter"]
    log_d_pred = variance_predictor(x, src_mask, params["dur_pred"], vpf)

    p_pred = variance_predictor(x, src_mask, params["pitch_pred"], vpf)
    p_emb = params["pitch_emb"][jnp.searchsorted(params["pitch_bins"], p_target)]
    x = x + p_emb

    e_pred = variance_predictor(x, src_mask, params["energy_pred"], vpf)
    e_emb = params["energy_emb"][jnp.searchsorted(params["energy_bins"], e_target)]
    x = x + e_emb

    x, mel_len = length_regulator(x, d_target, max_mel_len)
    return x, p_pred, e_pred, log_d_pred, d_target, mel_len, mel_mask


def batch_norm(x, g, b, eps=1e-5):
    # TODO(synk): training-mode batch statistics (eval would use running
    # stats); BN + tanh applied in plain JAX, not fused into the conv epilogue.
    xf = x.astype(jnp.float32)
    mu = jnp.mean(xf, axis=(0, 1), keepdims=True)
    var = jnp.mean(jnp.square(xf - mu), axis=(0, 1), keepdims=True)
    return (xf - mu) * jax.lax.rsqrt(var + eps) * g + b


def postnet_fn(x, layers):
    y = x
    n = len(layers)
    for i, lp in enumerate(layers):
        y = conv1d(y, lp["conv"])
        y = batch_norm(y, lp["bn_g"], lp["bn_b"])
        if i < n - 1:
            y = jnp.tanh(y)
        y = y.astype(jnp.bfloat16)
    return y


def fastspeech2_forward(params, spks, texts, src_lens, max_src_len,
                        mels, mel_lens, max_mel_len,
                        p_targets, e_targets, d_targets,
                        p_control=1.0, e_control=1.0, d_control=1.0):
    cfg = params["cfg"]
    n_mels = cfg["n_mels"]
    src_masks = get_mask_from_lengths(src_lens, max_src_len)
    mel_masks = get_mask_from_lengths(mel_lens, max_mel_len)

    # ---- Encoder ----
    x = params["word_emb"][texts] + params["pos_table"][None, :max_src_len, :]
    for layer in params["enc_layers"]:
        x = fft_block(x, src_masks, layer, cfg)

    # ---- speaker embedding (multi_speaker) ----
    x = x + params["spk_emb"][spks][:, None, :]

    # ---- Variance adaptor ----
    (x, p_pred, e_pred, log_d_pred, d_rounded,
     mel_len_out, mel_masks) = variance_adaptor(
        params, x, src_masks, mel_masks, max_mel_len,
        p_targets, e_targets, d_targets)

    # ---- Decoder ----
    x = x + params["pos_table"][None, :max_mel_len, :]
    for layer in params["dec_layers"]:
        x = fft_block(x, mel_masks, layer, cfg)

    # ---- mel projection + PostNet (padded channel layout) ----
    output_p = dense(x, params["mel"])                       # (B, M, mel_p) bf16
    postnet_p = postnet_fn(output_p, params["postnet"]) + output_p

    # ---- FastSpeech2Loss ----
    src_valid = ~src_masks
    mel_valid = ~mel_masks
    mels_p = pad_lanes(mels)                                 # padded target lanes are zero
    log_d_targets = jnp.log(d_targets.astype(jnp.float32) + 1.0)
    mel_count = jnp.sum(mel_lens) * n_mels
    src_count = jnp.sum(src_lens)

    mel_loss = masked_loss(output_p, mels_p, mel_valid, mel_count, "l1")
    post_mel_loss = masked_loss(postnet_p, mels_p, mel_valid, mel_count, "l1")
    pitch_loss = masked_loss(p_pred[..., None], p_targets[..., None],
                             src_valid, src_count, "l2")
    energy_loss = masked_loss(e_pred[..., None], e_targets[..., None],
                              src_valid, src_count, "l2")
    duration_loss = masked_loss(log_d_pred[..., None], log_d_targets[..., None],
                                src_valid, src_count, "l2")
    total_loss = (mel_loss + post_mel_loss + duration_loss
                  + pitch_loss + energy_loss)

    output = output_p[..., :n_mels].astype(jnp.float32)
    postnet_output = postnet_p[..., :n_mels].astype(jnp.float32)

    report_keys = {
        "loss": total_loss, "mel_loss": mel_loss, "post_mel_loss": post_mel_loss,
        "pitch_loss": pitch_loss, "energy_loss": energy_loss,
        "duration_loss": duration_loss,
    }
    return total_loss, report_keys, output, postnet_output


# ---------------------------------------------------------------------------
# Deterministic parameter construction (prepared: padded + bf16)
# ---------------------------------------------------------------------------

def sinusoid_table(n_position, d_hid):
    pos = np.arange(n_position)[:, None].astype(np.float64)
    i = np.arange(d_hid)[None, :].astype(np.float64)
    angle = pos / np.power(10000.0, 2.0 * (i // 2) / d_hid)
    table = np.zeros((n_position, d_hid), dtype=np.float64)
    table[:, 0::2] = np.sin(angle[:, 0::2])
    table[:, 1::2] = np.cos(angle[:, 1::2])
    return jnp.asarray(table, jnp.float32)


def init_params(key, cfg):
    D = cfg["d_model"]
    H, dk, dv = cfg["n_head"], cfg["d_k"], cfg["d_v"]
    d_inner = cfg["d_inner"]
    k1, k2 = cfg["fft_kernel"]
    vpf = cfg["vp_filter"]
    n_bins = cfg["n_bins"]
    n_mels = cfg["n_mels"]
    pn_dim = cfg["postnet_dim"]
    qdim, vdim = H * dk, H * dv
    scale = 1.0 / float(np.sqrt(dk))

    keys = iter(jax.random.split(key, 512))

    def nrm(shape, s=0.1):
        return jax.random.normal(next(keys), shape, jnp.float32) * s

    def zeros(*shape):
        return jnp.zeros(shape, jnp.float32)

    def ones(*shape):
        return jnp.ones(shape, jnp.float32)

    def fft_layer():
        w_qkv = nrm((D, 2 * qdim + vdim))
        b_qkv = zeros(2 * qdim + vdim)
        # fold 1/sqrt(d_k) into the query projection at init (no per-call scale)
        w_qkv = w_qkv.at[:, :qdim].multiply(scale)
        b_qkv = b_qkv.at[:qdim].multiply(scale)
        ln1_g, ln1_b = prep_ln(ones(D), zeros(D))
        ln2_g, ln2_b = prep_ln(ones(D), zeros(D))
        return {
            "qkv": prep_dense(w_qkv, b_qkv),
            "out": prep_dense(nrm((vdim, D)), zeros(D)),
            "ln1_g": ln1_g, "ln1_b": ln1_b,
            "conv1": prep_conv(nrm((d_inner, D, k1)), zeros(d_inner), (k1 - 1) // 2),
            "conv2": prep_conv(nrm((D, d_inner, k2)), zeros(D), (k2 - 1) // 2),
            "ln2_g": ln2_g, "ln2_b": ln2_b,
        }

    def var_predictor():
        ln1_g, ln1_b = prep_ln(ones(vpf), zeros(vpf))
        ln2_g, ln2_b = prep_ln(ones(vpf), zeros(vpf))
        return {
            "conv1": prep_conv(nrm((vpf, D, 3)), zeros(vpf), 1),
            "ln1_g": ln1_g, "ln1_b": ln1_b,
            "conv2": prep_conv(nrm((vpf, vpf, 3)), zeros(vpf), 1),
            "ln2_g": ln2_g, "ln2_b": ln2_b,
            "lin": prep_dense(nrm((vpf, 1)), zeros(1)),
        }

    word_emb = nrm((cfg["vocab"], D)).at[0].set(0.0)   # padding_idx = 0

    chans = [n_mels] + [pn_dim] * (cfg["postnet_layers"] - 1) + [n_mels]
    postnet = []
    for i in range(cfg["postnet_layers"]):
        cin, cout = chans[i], chans[i + 1]
        coutp = _round_up(cout, LANE)
        postnet.append({
            "conv": prep_conv(nrm((cout, cin, 5)), zeros(cout), 2),
            "bn_g": jnp.pad(ones(cout), (0, coutp - cout)),
            "bn_b": jnp.pad(zeros(cout), (0, coutp - cout)),
        })

    return {
        "cfg": cfg,
        "word_emb": prep_emb(word_emb),
        "spk_emb": prep_emb(nrm((cfg["n_spk"], D))),
        "pos_table": prep_emb(sinusoid_table(cfg["max_pos"], D)),
        "enc_layers": [fft_layer() for _ in range(cfg["enc_layers"])],
        "dec_layers": [fft_layer() for _ in range(cfg["dec_layers"])],
        "dur_pred": var_predictor(),
        "pitch_pred": var_predictor(),
        "energy_pred": var_predictor(),
        "pitch_bins": jnp.linspace(0.0, 1.0, n_bins - 1),
        "energy_bins": jnp.linspace(0.0, 1.0, n_bins - 1),
        "pitch_emb": prep_emb(nrm((n_bins, D))),
        "energy_emb": prep_emb(nrm((n_bins, D))),
        "mel": prep_dense(nrm((D, n_mels)), zeros(n_mels)),
        "postnet": postnet,
    }


# ---------------------------------------------------------------------------
# main
# ---------------------------------------------------------------------------

if __name__ == "__main__":
    cfg = dict(d_model=32, n_head=2, d_k=16, d_v=16, d_inner=64,
               fft_kernel=(3, 1), enc_layers=2, dec_layers=2,
               vp_filter=32, n_bins=16, n_mels=16,
               postnet_dim=32, postnet_layers=3,
               vocab=20, n_spk=4, max_pos=64)

    key = jax.random.PRNGKey(0)
    kp, kd = jax.random.split(key)
    params = init_params(kp, cfg)

    B, T, M = 2, 8, 16
    ks = jax.random.split(kd, 8)

    src_lens = jnp.array([8, 6], jnp.int32)
    mel_lens = jnp.array([16, 12], jnp.int32)
    texts = jax.random.randint(ks[0], (B, T), 1, cfg["vocab"], jnp.int32)
    valid = jnp.arange(T)[None, :] < src_lens[:, None]
    texts = jnp.where(valid, texts, 0)
    spks = jnp.array([0, 1], jnp.int32)
    d_targets = jnp.array([[2, 2, 2, 2, 2, 2, 2, 2],
                           [2, 2, 2, 2, 2, 2, 0, 0]], jnp.int32)
    p_targets = jnp.where(valid, jax.random.uniform(ks[1], (B, T)), 0.0)
    e_targets = jnp.where(valid, jax.random.uniform(ks[2], (B, T)), 0.0)
    mels = jax.random.normal(ks[3], (B, M, cfg["n_mels"]), jnp.float32)

    total_loss, report, output, postnet_output = fastspeech2_forward(
        params, spks, texts, src_lens, T, mels, mel_lens, M,
        p_targets, e_targets, d_targets)

    jax.block_until_ready((total_loss, output, postnet_output))
    assert output.shape == (B, M, cfg["n_mels"])
    assert postnet_output.shape == (B, M, cfg["n_mels"])
    assert bool(jnp.isfinite(total_loss))
    print("KERNEL_OK")
</pallas_src>

<mosaic_0001>
module attributes {stable_mosaic.version = 11 : i64} {
  func.func @_dense_kernel(%arg0: i32, %arg1: i32, %arg2: i32, %arg3: memref<16x128xbf16, #tpu.memory_space<vmem>>, %arg4: memref<128x128xbf16, #tpu.memory_space<vmem>>, %arg5: memref<1x128xf32, #tpu.memory_space<vmem>>, %arg6: memref<16x128xbf16, #tpu.memory_space<vmem>>, %arg7: memref<16x128xf32, #tpu.memory_space<vmem>>) attributes {dimension_semantics = [#tpu.dimension_semantics<parallel>, #tpu.dimension_semantics<parallel>, #tpu.dimension_semantics<arbitrary>], iteration_bounds = array<i64: 1, 1, 1>, scalar_prefetch = 0 : i64, scratch_operands = 1 : i64, tpu.core_type = #tpu.core_type<tc>, window_params = [{transform_indices = @transform_0, window_bounds = array<i64: 16, 128>}, {transform_indices = @transform_1, window_bounds = array<i64: 128, 128>}, {transform_indices = @transform_2, window_bounds = array<i64: 1, 128>}, {transform_indices = @transform_3, window_bounds = array<i64: 16, 128>}]} {
    %c0_i32 = arith.constant 0 : i32
    %0 = arith.cmpi eq, %arg2, %c0_i32 : i32
    %1 = arith.extui %0 : i1 to i32
    %c0_i32_0 = arith.constant 0 : i32
    %2 = arith.cmpi ne, %1, %c0_i32_0 : i32
    scf.if %2 {
      %cst_10 = arith.constant 0.000000e+00 : f32
      %12 = vector.broadcast %cst_10 : f32 to vector<16x128xf32>
      %c0_11 = arith.constant 0 : index
      %c0_12 = arith.constant 0 : index
      %13 = vector.load %arg7[%c0_11, %c0_12] : memref<16x128xf32, #tpu.memory_space<vmem>>, vector<16x128xf32>
      tpu.vector_store %arg7[%c0_11, %c0_12], %12 {strides = array<i32>} : memref<16x128xf32, #tpu.memory_space<vmem>>, vector<16x128xf32>,
    } else {
    }
    %c0 = arith.constant 0 : index
    %c0_1 = arith.constant 0 : index
    %3 = vector.load %arg7[%c0, %c0_1] : memref<16x128xf32, #tpu.memory_space<vmem>>, vector<16x128xf32>
    %c0_2 = arith.constant 0 : index
    %c0_3 = arith.constant 0 : index
    %4 = vector.load %arg3[%c0_2, %c0_3] : memref<16x128xbf16, #tpu.memory_space<vmem>>, vector<16x128xbf16>
    %c0_4 = arith.constant 0 : index
    %c0_5 = arith.constant 0 : index
    %5 = vector.load %arg4[%c0_4, %c0_5] : memref<128x128xbf16, #tpu.memory_space<vmem>>, vector<128x128xbf16>
    %cst = arith.constant dense<0.000000e+00> : vector<16x128xf32>
    %6 = tpu.matmul %4, %5, %cst {dimension_numbers = #tpu.dot_dimension_numbers<[1], [0], [0], [1], [0, 0, 1, 1], [], []>} : vector<16x128xbf16>, vector<128x128xbf16>, vector<16x128xf32> -> vector<16x128xf32>
    %7 = arith.addf %3, %6 : vector<16x128xf32>
    %c0_6 = arith.constant 0 : index
    %c0_7 = arith.constant 0 : index
    %8 = vector.load %arg7[%c0_6, %c0_7] : memref<16x128xf32, #tpu.memory_space<vmem>>, vector<16x128xf32>
    tpu.vector_store %arg7[%c0_6, %c0_7], %7 {strides = array<i32>} : memref<16x128xf32, #tpu.memory_space<vmem>>, vector<16x128xf32>,
    %c0_i32_8 = arith.constant 0 : i32
    %9 = arith.cmpi eq, %arg2, %c0_i32_8 : i32
    %10 = arith.extui %9 : i1 to i32
    %c0_i32_9 = arith.constant 0 : i32
    %11 = arith.cmpi ne, %10, %c0_i32_9 : i32
    scf.if %11 {
      %c0_10 = arith.constant 0 : index
      %c0_11 = arith.constant 0 : index
      %12 = vector.load %arg7[%c0_10, %c0_11] : memref<16x128xf32, #tpu.memory_space<vmem>>, vector<16x128xf32>
      %c0_12 = arith.constant 0 : index
      %c0_13 = arith.constant 0 : index
      %13 = vector.load %arg5[%c0_12, %c0_13] : memref<1x128xf32, #tpu.memory_space<vmem>>, vector<1x128xf32>
      %14 = vector.broadcast %13 : vector<1x128xf32> to vector<16x128xf32>
      %15 = arith.addf %12, %14 : vector<16x128xf32>
      %16 = arith.truncf %15 : vector<16x128xf32> to vector<16x128xbf16>
      %c0_14 = arith.constant 0 : index
      %c0_15 = arith.constant 0 : index
      %17 = vector.load %arg6[%c0_14, %c0_15] : memref<16x128xbf16, #tpu.memory_space<vmem>>, vector<16x128xbf16>
      tpu.vector_store %arg6[%c0_14, %c0_15], %16 {strides = array<i32>} : memref<16x128xbf16, #tpu.memory_space<vmem>>, vector<16x128xbf16>,
    } else {
    }
    return
  }
  func.func @transform_0(%arg0: i32, %arg1: i32, %arg2: i32) -> (i32, i32) {
    %c0_i32 = arith.constant 0 : i32
    return %arg0, %arg2 : i32, i32
  }
  func.func @transform_1(%arg0: i32, %arg1: i32, %arg2: i32) -> (i32, i32) {
    %c0_i32 = arith.constant 0 : i32
    return %arg2, %arg1 : i32, i32
  }
  func.func @transform_2(%arg0: i32, %arg1: i32, %arg2: i32) -> (i32, i32) {
    %c0_i32 = arith.constant 0 : i32
    %c0_i32_0 = arith.constant 0 : i32
    return %c0_i32, %arg1 : i32, i32
  }
  func.func @transform_3(%arg0: i32, %arg1: i32, %arg2: i32) -> (i32, i32) {
    %c0_i32 = arith.constant 0 : i32
    return %arg0, %arg1 : i32, i32
  }
}

</mosaic_0001>

<bundles_post_ra>
// kernel: tpu_custom_call.1
= control target key start
LH: loop header
LB: loop body
LE: loop exit
PB: predicated region body
PF: predicated region fallthrough
CT: control target
= control target key end

     0   :  { %8 = vsyncpa [#allocation4], 0  ;;  %s473_s0 = inlined_call_operand.hbm [shape: bf16[16,128], index: 0, kind: input, shape index: {}]   ;;  %s474_s1 = inlined_call_operand.hbm [shape: bf16[128,128], index: 1, kind: input, shape index: {}]   ;;  %s475_s2 = inlined_call_operand.hbm [shape: f32[1,128], index: 2, kind: input, shape index: {}]   ;;  %s476_s3 = inlined_call_operand.hbm [shape: bf16[16,128], index: 3, kind: output, shape index: {}]  }
   0x1   :  { %9 = vsyncpa [#allocation7], 0 }
   0x2   :  { %10 = vsyncpa [#allocation5], 0  ;;  %s381_s12 = smov [#allocation6]   ;;  %s382_s14 = smov [#allocation3]  }
   0x3   :  { %s28_s13 = sshll.u32 %s381_s12, 4  ;;  %s16_s15 = sshll.u32 %s382_s14, 4  ;;  %s29_s13 = int_to_ptr.vmem [resolvable:$true] %s28_s13  ;;  %s409_s15 = int_to_ptr.vmem [resolvable:$true] %s16_s15 }
   0x4   :  { %s287_s18 = scalar_lea.hbm %s474_s1, 1024 }
   0x5   :  { %p288_p0 = scmp.ne.s32.totalorder %s474_s1, %s287_s18  ;;  %p291_p1 = scmp.lt.u32.totalorder %s287_s18, %s474_s1 }
   0x7   :  { %p293_p2 = pnand %p291_p1, %p288_p0 }
   0x9   :  { %296 = shalt.err (!%p293_p2)
}
   0xa   :  { %s297_s23 = scalar_lea.vmem %s29_s13, 1024  ;;  %p302_p4 = scmp.lt.s32.totalorder %s29_s13, %s29_s13 }
   0xb   :  { %p298_p3 = scmp.ne.s32.totalorder %s29_s13, %s297_s23  ;;  %p303_p5 = scmp.lt.s32.totalorder %s297_s23, %s297_s23 }
   0xd   :  { %p304_p6 = por %p303_p5, %p302_p4 }
   0xf   :  { %p305_p7 = pnand %p304_p6, %p298_p3 }
  0x11   :  { %308 = shalt.err (!%p305_p7)
}
  0x12   :  { %s383_s24 = smov 64   ;;  %s384_s25 = smov 4  }
  0x13   :  { %34 = dma.hbm_to_vmem [thread:$0]  %s474_s1, 1024, %s29_s13, [#allocation7], %s383_s24, %s383_s24, %s384_s25  }
  0x14   :  { %s309_s30 = scalar_lea.hbm %s473_s0, 128 }
  0x15   :  { %p310_p8 = scmp.ne.s32.totalorder %s473_s0, %s309_s30  ;;  %p313_p9 = scmp.lt.u32.totalorder %s309_s30, %s473_s0 }
  0x17   :  { %p315_p10 = pnand %p313_p9, %p310_p8 }
  0x19   :  { %318 = shalt.err (!%p315_p10)
}
  0x1a   :  { %s319_s8 = scalar_lea.vmem %s409_s15, 128  ;;  %p324_p12 = scmp.lt.s32.totalorder %s409_s15, %s409_s15 }
  0x1b   :  { %p320_p11 = scmp.ne.s32.totalorder %s409_s15, %s319_s8  ;;  %p325_p13 = scmp.lt.s32.totalorder %s319_s8, %s319_s8 }
  0x1d   :  { %p326_p0 = por %p325_p13, %p324_p12 }
  0x1f   :  { %p327_p1 = pnand %p326_p0, %p320_p11 }
  0x21   :  { %330 = shalt.err (!%p327_p1)
}
  0x22   :  { %22 = dma.hbm_to_vmem [thread:$0]  %s473_s0, 128, %s409_s15, [#allocation4], %s383_s24, %s383_s24, %s384_s25  }
  0x23   :  { %s385_s10 = smov [#allocation8]   ;;  %s331_s14 = scalar_lea.hbm %s475_s2, 16 }
  0x24   :  { %s41_s11 = sshll.u32 %s385_s10, 4  ;;  %p332_p2 = scmp.ne.s32.totalorder %s475_s2, %s331_s14  ;;  %s42_s11 = int_to_ptr.vmem [resolvable:$true] %s41_s11 }
  0x25   :  { %p335_p3 = scmp.lt.u32.totalorder %s331_s14, %s475_s2 }
  0x27   :  { %p337_p4 = pnand %p335_p3, %p332_p2 }
  0x29   :  { %340 = shalt.err (!%p337_p4)
}
  0x2a   :  { %s341_s20 = scalar_lea.vmem %s42_s11, 16  ;;  %s345_s0 = scalar_lea.vmem %s42_s11, 32 }
  0x2b   :  { %p342_p5 = scmp.ne.s32.totalorder %s42_s11, %s341_s20  ;;  %p346_p6 = scmp.lt.s32.totalorder %s42_s11, %s42_s11 }
  0x2c   :  { %p347_p7 = scmp.lt.s32.totalorder %s345_s0, %s341_s20 }
  0x2e   :  { %p348_p8 = por %p347_p7, %p346_p6 }
  0x30   :  { %p349_p9 = pnand %p348_p8, %p342_p5 }
  0x32   :  { %352 = shalt.err (!%p349_p9)
}
  0x33   :  { %44 = dma.hbm_to_vmem [thread:$0]  %s475_s2, 16, %s42_s11, [#allocation7]  }
  0x34   :  { %375 = dma.done.wait [#allocation4], 128  }
  0x35   :  { %376 = vsyncadd [#allocation4], 4294967168 }
  0x36   :  { %377 = dma.done.wait [#allocation7], 1040  }
  0x37   :  { %378 = vsyncadd [#allocation7], 4294966256  ;;  %v386_v0 = vmov 0.0   ;;  %vm387_vm0 = vmmov 0   ;;  %v278_v1 = vld [vmem:[#allocation6] sm:$0xff]   ;;  %v279_v2 = vld [vmem:[#allocation6 + $0x8] sm:$0xff]  }
  0x38   :  { %250 = vmatprep.subr.bf16.mxu0 %v386_v0  ;;  %266 = vmatprep.mubr.msk.bf16.mxu0 %vm387_vm0, %v386_v0  ;;  %v280_v3 = vld [vmem:[#allocation6 + $0x10] sm:$0xff]   ;;  %v281_v4 = vld [vmem:[#allocation6 + $0x18] sm:$0xff]   ;;  %v282_v5 = vld [vmem:[#allocation6 + $0x20] sm:$0xff]   ;;  %s388_s2 = smov [#allocation9]  }
  0x39   :  { %251 = vmatpush3.bf16.msra.mxu0 %v278_v1  ;;  %v283_v6 = vld [vmem:[#allocation6 + $0x28] sm:$0xff]   ;;  %v284_v7 = vld [vmem:[#allocation6 + $0x30] sm:$0xff]   ;;  %v285_v8 = vld [vmem:[#allocation6 + $0x38] sm:$0xff]   ;;  %s209_s22 = sshll.u32 %s388_s2, 4  ;;  %s210_s22 = int_to_ptr.vmem [resolvable:$true] %s209_s22 }
  0x3a   :  { %252 = vmatprep.subr.bf16.mxu0 %v386_v0  ;;  %v286_v9 = vld [vmem:[#allocation3] sm:$0xff]   ;;  %v231_v11 = vld [vmem:[#allocation8] ss:$0 sm:$0xff]  ;;  %s353_s23 = scalar_lea.vmem %s210_s22, 128  ;;  %p358_p11 = scmp.lt.s32.totalorder %s210_s22, %s210_s22 }
  0x3b   :  { %p354_p10 = scmp.ne.s32.totalorder %s210_s22, %s353_s23  ;;  %p359_p12 = scmp.lt.s32.totalorder %s353_s23, %s353_s23 }
  0x3d   :  { %253 = vmatpush3.bf16.msra.mxu0 %v279_v2  ;;  %p360_p13 = por %p359_p12, %p358_p11 }
  0x3e   :  { %254 = vmatprep.subr.bf16.mxu0 %v386_v0 }
  0x3f   :  { %p361_p0 = pnand %p360_p13, %p354_p10 }
  0x41   :  { %255 = vmatpush3.bf16.msra.mxu0 %v280_v3 }
  0x42   :  { %256 = vmatprep.subr.bf16.mxu0 %v386_v0 }
  0x45   :  { %257 = vmatpush3.bf16.msra.mxu0 %v281_v4 }
  0x46   :  { %258 = vmatprep.subr.bf16.mxu0 %v386_v0 }
  0x49   :  { %259 = vmatpush3.bf16.msra.mxu0 %v282_v5 }
  0x4a   :  { %260 = vmatprep.subr.bf16.mxu0 %v386_v0 }
  0x4d   :  { %261 = vmatpush3.bf16.msra.mxu0 %v283_v6 }
  0x4e   :  { %262 = vmatprep.subr.bf16.mxu0 %v386_v0 }
  0x51   :  { %263 = vmatpush3.bf16.msra.mxu0 %v284_v7 }
  0x52   :  { %264 = vmatprep.subr.bf16.mxu0 %v386_v0 }
  0x55   :  { %265 = vmatpush3.bf16.msra.mxu0 %v285_v8 }
  0x58   :  { %267 = vmatmul.mubr.bf16.vlgmr.msra.gmra.mrb[0].mxu0 %v286_v9 }
 0x12b   :  { %v169_v10 = vpop.f32.mrb[0].mxu0 }
 0x12c   :  { %v268_v12 = vpop.f32.mrb[1].mxu0  ;;  %v192_v14 = vadd.f32 %v231_v11, %v169_v10 }
 0x12d   :  { %v172_v13 = vpop.f32.mrb[2].mxu0 }
 0x12e   :  { %v193_v15 = vadd.f32 %v231_v11, %v172_v13  ;;  %v269_v16 = vpop.f32.mrb[3].mxu0 }
 0x130   :  { %v239_v17 = vpack.c.bf16 %v193_v15, %v192_v14 }
 0x132   :  { %240 = vst [vmem:[#allocation9] sm:$0xff] %v239_v17  }
 0x133   :  { %364 = shalt.err (!%p361_p0)
}
 0x134   :  { %s365_s28 = scalar_lea.hbm %s476_s3, 128 }
 0x135   :  { %p366_p1 = scmp.ne.s32.totalorder %s476_s3, %s365_s28  ;;  %p369_p2 = scmp.lt.u32.totalorder %s365_s28, %s476_s3 }
 0x137   :  { %p371_p3 = pnand %p369_p2, %p366_p1 }
 0x139   :  { %374 = shalt.err (!%p371_p3)
}
 0x13a   :  { %215 = dma.vmem_to_hbm [thread:$0]  %s210_s22, 128, %s476_s3, [#allocation5], %s383_s24, %s383_s24, %s384_s25  }
 0x13b   :  { %379 = dma.done.wait [#allocation5], 128  }
 0x13c   :  { %380 = vsyncadd [#allocation5], 4294967168 }
 0x13d   :  { %219 = vsyncpa [#allocation4], 1 }
 0x13e   :  { %220 = vsyncpa [#allocation7], 1 }
 0x13f   :  { %221 = vsyncpa [#allocation5], 1 }

</bundles_post_ra>
